<compile_context>
chip_gen: v6e
topology: v6e:2x2x1
jax: 0.10.0
libtpu: 0.0.40
codegen_flags: <defaults>
</compile_context>

<pallas_src>
import jax
import jax.numpy as jnp
from jax import lax
from jax.experimental import pallas as pl
from jax.experimental.pallas import tpu as pltpu


def graphsage_kernel(x_full_ref, x_tile_ref, idx_ref, w1t_ref, b1_ref,
                     w2at_ref, w2bt_ref, b2_ref, o_ref, z_ref):
    """Per (batch, vertex-tile) GraphSAGE body (channels-major).

    x_full_ref : (1, C, N)      bf16   all vertex features of this batch element
    x_tile_ref : (1, C, TN)     bf16   this vertex tile (nn2 self term)
    idx_ref    : (1, K, TN)     int32  neighbor indices for this vertex tile
    w1t_ref    : (C, C)         bf16   nn1 weight, output-major (z = W1^T x)
    b1_ref     : (C, 1)         f32
    w2at_ref   : (Coutp, C)     bf16   nn2 rows acting on x      (w2[:C]^T, padded)
    w2bt_ref   : (Coutp, C)     bf16   nn2 rows acting on max_j  (w2[C:]^T, padded)
    b2_ref     : (Coutp, 1)     f32
    o_ref      : (1, Coutp, TN) f32
    z_ref      : (C, N)         bf16   VMEM scratch: cache of W1^T x for this batch
    """
    t = pl.program_id(1)
    n_all = x_full_ref.shape[2]
    tn = o_ref.shape[2]
    k_neighbors = idx_ref.shape[1]

    # nn1's linear map commutes with the neighbor gather -> apply it once per batch
    # element (at the first vertex tile) and cache across tiles.
    @pl.when(t == 0)
    def _():
        z_ref[...] = jnp.dot(
            w1t_ref[...], x_full_ref[0], preferred_element_type=jnp.float32
        ).astype(z_ref.dtype)

    z = z_ref[...]                       # (C, N)  bf16
    idx = idx_ref[0]                     # (K, TN) int32

    # Gather + max over the K neighbors.  Each gather is a one-hot selection matmul
    # on the MXU with TN output lanes (dense); the running max is a cheap VPU op.
    # TODO(synk): for very large N, replace the one-hot matmul (O(N*TN) work per k)
    # with a per-row DMA gather.
    row = lax.broadcasted_iota(jnp.int32, (n_all, tn), 0)
    acc = None
    for k in range(k_neighbors):
        onehot = jnp.where(idx[k:k + 1, :] == row, 1.0, 0.0).astype(z.dtype)  # (N, TN)
        gk = jnp.dot(z, onehot, preferred_element_type=jnp.float32)           # (C, TN)
        acc = gk if acc is None else jnp.maximum(acc, gk)

    # Bias + ReLU hoisted out of the K-max (equivalent: +b1 is k-invariant, ReLU is
    # monotone) -> runs once per tile instead of K times.
    h = jnp.maximum(acc + b1_ref[...], 0.0)                                    # (C, TN) f32

    # nn2 on cat([x, h], channel dim) without the concat: split-weight matmuls.
    out = jnp.dot(w2at_ref[...], x_tile_ref[0], preferred_element_type=jnp.float32)
    out = out + jnp.dot(w2bt_ref[...], h.astype(w2bt_ref.dtype),
                        preferred_element_type=jnp.float32)
    out = out + b2_ref[...]
    o_ref[0] = jnp.maximum(out, 0.0).astype(o_ref.dtype)


def _pick_tile_n(n):
    """Vertex-tile size (lane dim): full N for small / non-128-multiple graphs;
    otherwise the largest 128-multiple divisor whose per-tile one-hot working set
    (iota + one-hot, ~6*N*TN bytes) stays comfortably inside VMEM."""
    if n <= 512 or n % 128 != 0:
        return n
    budget = 24 * 1024 * 1024
    for cand in (1024, 512, 256, 128):
        if n % cand == 0 and 6 * n * cand <= budget:
            return cand
    return 128


@jax.jit
def graphsage_forward(x_nchw, edge_index, w1, b1, w2, b2):
    """x_nchw: (B, C, N, 1) f32, edge_index: (2, B, N, K) int32,
    w1: (C, C) input-major (y = x @ W1), b1: (1, C),
    w2: (2C, Cout) input-major, b2: (1, Cout)."""
    B, C, N, _ = x_nchw.shape
    K = edge_index.shape[-1]
    Cout = w2.shape[-1]
    LANE = 128
    Coutp = ((Cout + LANE - 1) // LANE) * LANE      # lane-padded output channels

    tn = _pick_tile_n(N)
    T = N // tn

    # Channels-major (native NCHW, trailing 1 squeezed): no transposes needed.
    x_bcn = x_nchw[..., 0].astype(jnp.bfloat16)                                # (B, C, N)
    idx_t = jnp.transpose(edge_index[0], (0, 2, 1)).astype(jnp.int32)          # (B, K, N)

    w1t = jnp.transpose(w1).astype(jnp.bfloat16)                               # (C, C)
    w2at = jnp.pad(jnp.transpose(w2[:C]).astype(jnp.bfloat16),
                   ((0, Coutp - Cout), (0, 0)))                                # (Coutp, C)
    w2bt = jnp.pad(jnp.transpose(w2[C:]).astype(jnp.bfloat16),
                   ((0, Coutp - Cout), (0, 0)))                                # (Coutp, C)
    b1c = jnp.transpose(b1).astype(jnp.float32)                                # (C, 1)
    b2c = jnp.pad(jnp.transpose(b2).astype(jnp.float32),
                  ((0, Coutp - Cout), (0, 0)))                                 # (Coutp, 1)

    flops = 2 * B * (C * C * N + K * C * N * N + 2 * Coutp * C * N)
    bytes_accessed = (2 * x_bcn.size * 2 + idx_t.size * 4
                      + (w1t.size + w2at.size + w2bt.size) * 2
                      + (b1c.size + b2c.size) * 4
                      + B * Coutp * N * 4)

    out_padded = pl.pallas_call(
        graphsage_kernel,
        out_shape=jax.ShapeDtypeStruct((B, Coutp, N), jnp.float32),
        grid=(B, T),
        in_specs=[
            pl.BlockSpec((1, C, N), lambda b, t: (b, 0, 0)),      # x: all vertices of batch b
            pl.BlockSpec((1, C, tn), lambda b, t: (b, 0, t)),     # x: this vertex tile
            pl.BlockSpec((1, K, tn), lambda b, t: (b, 0, t)),     # neighbor idx tile (K, TN)
            pl.BlockSpec((C, C), lambda b, t: (0, 0)),
            pl.BlockSpec((C, 1), lambda b, t: (0, 0)),
            pl.BlockSpec((Coutp, C), lambda b, t: (0, 0)),
            pl.BlockSpec((Coutp, C), lambda b, t: (0, 0)),
            pl.BlockSpec((Coutp, 1), lambda b, t: (0, 0)),
        ],
        out_specs=pl.BlockSpec((1, Coutp, tn), lambda b, t: (b, 0, t)),
        scratch_shapes=[pltpu.VMEM((C, N), jnp.bfloat16)],
        compiler_params=pltpu.CompilerParams(
            dimension_semantics=("parallel", "arbitrary"),
            vmem_limit_bytes=48 * 1024 * 1024),
        cost_estimate=pl.CostEstimate(
            flops=flops, transcendentals=0, bytes_accessed=bytes_accessed),
    )(x_bcn, x_bcn, idx_t, w1t, b1c, w2at, w2bt, b2c)

    # Drop lane padding on channels; already channel-major -> just add trailing 1.
    return out_padded[:, :Cout, :, None]


def reference_forward(x_nchw, edge_index, w1, b1, w2, b2):
    """Pure-JAX reference mirroring the PyTorch module (ReLU-then-max, concat).
    Inputs/weights are passed through bf16 at the same boundary as the kernel so
    the comparison only measures the kernel's own numerics (f32 math here)."""
    x_bnc = jnp.transpose(x_nchw[..., 0], (0, 2, 1)).astype(jnp.bfloat16).astype(jnp.float32)
    w1f = w1.astype(jnp.bfloat16).astype(jnp.float32)
    w2f = w2.astype(jnp.bfloat16).astype(jnp.float32)
    idx = edge_index[0]
    x_j = jax.vmap(lambda xb, ib: xb[ib])(x_bnc, idx)                  # (B, N, K, C)
    h = jnp.maximum(jnp.einsum("bnkc,cd->bnkd", x_j, w1f) + b1, 0.0)
    x_max = jnp.max(h, axis=2)                                         # (B, N, C)
    cat = jnp.concatenate([x_bnc, x_max], axis=-1)                     # (B, N, 2C)
    out = jnp.maximum(jnp.einsum("bnc,cd->bnd", cat, w2f) + b2, 0.0)
    return jnp.transpose(out, (0, 2, 1))[..., None]


if __name__ == "__main__":
    B, C, N, K, COUT = 2, 16, 16, 8, 32

    key = jax.random.PRNGKey(0)
    kx, kidx, kw1, kb1, kw2, kb2 = jax.random.split(key, 6)

    # Input: NCHW (B, C, N, 1), neighbor indices (2, B, N, K)
    x = jax.random.normal(kx, (B, C, N, 1), dtype=jnp.float32)
    edge_index = jax.random.randint(kidx, (2, B, N, K), 0, N, dtype=jnp.int32)

    # 1x1 Conv2d weights stored input-major (Cin, Cout) = W^T; BasicConv = conv + ReLU.
    w1 = jax.random.normal(kw1, (C, C), dtype=jnp.float32) * (1.0 / jnp.sqrt(C))
    b1 = jax.random.normal(kb1, (1, C), dtype=jnp.float32) * 0.02
    w2 = jax.random.normal(kw2, (2 * C, COUT), dtype=jnp.float32) * (1.0 / jnp.sqrt(2 * C))
    b2 = jax.random.normal(kb2, (1, COUT), dtype=jnp.float32) * 0.02

    out = graphsage_forward(x, edge_index, w1, b1, w2, b2)
    out = jax.block_until_ready(out)
    assert out.shape == (B, COUT, N, 1), out.shape

    ref = reference_forward(x, edge_index, w1, b1, w2, b2)
    max_err = float(jnp.max(jnp.abs(out - ref)))
    # bf16 activations/weights with f32 accumulation -> loosened tolerance.
    assert jnp.allclose(out, ref, atol=3e-2, rtol=3e-2), max_err

    print("KERNEL_OK")
</pallas_src>

<mosaic_0001>
module attributes {stable_mosaic.version = 11 : i64} {
  func.func @graphsage_kernel(%arg0: i32, %arg1: i32, %arg2: memref<1x16x16xbf16, #tpu.memory_space<vmem>>, %arg3: memref<1x16x16xbf16, #tpu.memory_space<vmem>>, %arg4: memref<1x8x16xi32, #tpu.memory_space<vmem>>, %arg5: memref<16x16xbf16, #tpu.memory_space<vmem>>, %arg6: memref<16x1xf32, #tpu.memory_space<vmem>>, %arg7: memref<128x16xbf16, #tpu.memory_space<vmem>>, %arg8: memref<128x16xbf16, #tpu.memory_space<vmem>>, %arg9: memref<128x1xf32, #tpu.memory_space<vmem>>, %arg10: memref<1x128x16xf32, #tpu.memory_space<vmem>>, %arg11: memref<16x16xbf16, #tpu.memory_space<vmem>>) attributes {dimension_semantics = [#tpu.dimension_semantics<parallel>, #tpu.dimension_semantics<arbitrary>], iteration_bounds = array<i64: 2, 1>, scalar_prefetch = 0 : i64, scratch_operands = 1 : i64, tpu.core_type = #tpu.core_type<tc>, window_params = [{transform_indices = @transform_0, window_bounds = array<i64: 1, 16, 16>}, {transform_indices = @transform_1, window_bounds = array<i64: 1, 16, 16>}, {transform_indices = @transform_2, window_bounds = array<i64: 1, 8, 16>}, {pipeline_mode = #tpu.pipeline_mode<synchronous>, transform_indices = @transform_3, window_bounds = array<i64: 16, 16>}, {pipeline_mode = #tpu.pipeline_mode<synchronous>, transform_indices = @transform_4, window_bounds = array<i64: 16, 1>}, {pipeline_mode = #tpu.pipeline_mode<synchronous>, transform_indices = @transform_5, window_bounds = array<i64: 128, 16>}, {pipeline_mode = #tpu.pipeline_mode<synchronous>, transform_indices = @transform_6, window_bounds = array<i64: 128, 16>}, {pipeline_mode = #tpu.pipeline_mode<synchronous>, transform_indices = @transform_7, window_bounds = array<i64: 128, 1>}, {transform_indices = @transform_8, window_bounds = array<i64: 1, 128, 16>}]} {
    %c0_i32 = arith.constant 0 : i32
    %0 = arith.cmpi eq, %arg1, %c0_i32 : i32
    %1 = arith.extui %0 : i1 to i32
    %c0_i32_0 = arith.constant 0 : i32
    %2 = arith.cmpi ne, %1, %c0_i32_0 : i32
    scf.if %2 {
      %c0_46 = arith.constant 0 : index
      %c0_47 = arith.constant 0 : index
      %99 = vector.load %arg5[%c0_46, %c0_47] : memref<16x16xbf16, #tpu.memory_space<vmem>>, vector<16x16xbf16>
      %c0_48 = arith.constant 0 : index
      %c0_49 = arith.constant 0 : index
      %c0_50 = arith.constant 0 : index
      %100 = vector.load %arg2[%c0_48, %c0_49, %c0_50] : memref<1x16x16xbf16, #tpu.memory_space<vmem>>, vector<1x16x16xbf16>
      %101 = vector.shape_cast %100 : vector<1x16x16xbf16> to vector<16x16xbf16>
      %cst_51 = arith.constant dense<0.000000e+00> : vector<16x16xf32>
      %102 = tpu.matmul %99, %101, %cst_51 {dimension_numbers = #tpu.dot_dimension_numbers<[1], [0], [0], [1], [0, 0, 1, 1], [], []>} : vector<16x16xbf16>, vector<16x16xbf16>, vector<16x16xf32> -> vector<16x16xf32>
      %103 = arith.truncf %102 : vector<16x16xf32> to vector<16x16xbf16>
      %c0_52 = arith.constant 0 : index
      %c0_53 = arith.constant 0 : index
      %104 = vector.load %arg11[%c0_52, %c0_53] : memref<16x16xbf16, #tpu.memory_space<vmem>>, vector<16x16xbf16>
      tpu.vector_store %arg11[%c0_52, %c0_53], %103 {strides = array<i32>} : memref<16x16xbf16, #tpu.memory_space<vmem>>, vector<16x16xbf16>,
    } else {
    }
    %c0 = arith.constant 0 : index
    %c0_1 = arith.constant 0 : index
    %3 = vector.load %arg11[%c0, %c0_1] : memref<16x16xbf16, #tpu.memory_space<vmem>>, vector<16x16xbf16>
    %c0_2 = arith.constant 0 : index
    %c0_3 = arith.constant 0 : index
    %c0_4 = arith.constant 0 : index
    %4 = vector.load %arg4[%c0_2, %c0_3, %c0_4] : memref<1x8x16xi32, #tpu.memory_space<vmem>>, vector<1x8x16xi32>
    %5 = vector.shape_cast %4 : vector<1x8x16xi32> to vector<8x16xi32>
    %6 = tpu.iota {dimensions = array<i32: 0>} : vector<16x16xi32>
    %7 = vector.extract_strided_slice %5 {offsets = [0, 0], sizes = [1, 16], strides = [1, 1]} : vector<8x16xi32> to vector<1x16xi32>
    %8 = vector.broadcast %7 : vector<1x16xi32> to vector<16x16xi32>
    %9 = arith.cmpi eq, %8, %6 : vector<16x16xi32>
    %cst = arith.constant 1.000000e+00 : f32
    %cst_5 = arith.constant 0.000000e+00 : f32
    %10 = vector.broadcast %cst : f32 to vector<16x16xf32>
    %11 = vector.broadcast %cst_5 : f32 to vector<16x16xf32>
    %12 = arith.select %9, %10, %11 : vector<16x16xi1>, vector<16x16xf32>
    %13 = arith.truncf %12 : vector<16x16xf32> to vector<16x16xbf16>
    %cst_6 = arith.constant dense<0.000000e+00> : vector<16x16xf32>
    %14 = tpu.matmul %3, %13, %cst_6 {dimension_numbers = #tpu.dot_dimension_numbers<[1], [0], [0], [1], [0, 0, 1, 1], [], []>} : vector<16x16xbf16>, vector<16x16xbf16>, vector<16x16xf32> -> vector<16x16xf32>
    %15 = vector.extract_strided_slice %5 {offsets = [1, 0], sizes = [1, 16], strides = [1, 1]} : vector<8x16xi32> to vector<1x16xi32>
    %16 = vector.broadcast %15 : vector<1x16xi32> to vector<16x16xi32>
    %17 = arith.cmpi eq, %16, %6 : vector<16x16xi32>
    %cst_7 = arith.constant 1.000000e+00 : f32
    %cst_8 = arith.constant 0.000000e+00 : f32
    %18 = vector.broadcast %cst_7 : f32 to vector<16x16xf32>
    %19 = vector.broadcast %cst_8 : f32 to vector<16x16xf32>
    %20 = arith.select %17, %18, %19 : vector<16x16xi1>, vector<16x16xf32>
    %21 = arith.truncf %20 : vector<16x16xf32> to vector<16x16xbf16>
    %cst_9 = arith.constant dense<0.000000e+00> : vector<16x16xf32>
    %22 = tpu.matmul %3, %21, %cst_9 {dimension_numbers = #tpu.dot_dimension_numbers<[1], [0], [0], [1], [0, 0, 1, 1], [], []>} : vector<16x16xbf16>, vector<16x16xbf16>, vector<16x16xf32> -> vector<16x16xf32>
    %23 = arith.maximumf %14, %22 : vector<16x16xf32>
    %24 = vector.extract_strided_slice %5 {offsets = [2, 0], sizes = [1, 16], strides = [1, 1]} : vector<8x16xi32> to vector<1x16xi32>
    %25 = vector.broadcast %24 : vector<1x16xi32> to vector<16x16xi32>
    %26 = arith.cmpi eq, %25, %6 : vector<16x16xi32>
    %cst_10 = arith.constant 1.000000e+00 : f32
    %cst_11 = arith.constant 0.000000e+00 : f32
    %27 = vector.broadcast %cst_10 : f32 to vector<16x16xf32>
    %28 = vector.broadcast %cst_11 : f32 to vector<16x16xf32>
    %29 = arith.select %26, %27, %28 : vector<16x16xi1>, vector<16x16xf32>
    %30 = arith.truncf %29 : vector<16x16xf32> to vector<16x16xbf16>
    %cst_12 = arith.constant dense<0.000000e+00> : vector<16x16xf32>
    %31 = tpu.matmul %3, %30, %cst_12 {dimension_numbers = #tpu.dot_dimension_numbers<[1], [0], [0], [1], [0, 0, 1, 1], [], []>} : vector<16x16xbf16>, vector<16x16xbf16>, vector<16x16xf32> -> vector<16x16xf32>
    %32 = arith.maximumf %23, %31 : vector<16x16xf32>
    %33 = vector.extract_strided_slice %5 {offsets = [3, 0], sizes = [1, 16], strides = [1, 1]} : vector<8x16xi32> to vector<1x16xi32>
    %34 = vector.broadcast %33 : vector<1x16xi32> to vector<16x16xi32>
    %35 = arith.cmpi eq, %34, %6 : vector<16x16xi32>
    %cst_13 = arith.constant 1.000000e+00 : f32
    %cst_14 = arith.constant 0.000000e+00 : f32
    %36 = vector.broadcast %cst_13 : f32 to vector<16x16xf32>
    %37 = vector.broadcast %cst_14 : f32 to vector<16x16xf32>
    %38 = arith.select %35, %36, %37 : vector<16x16xi1>, vector<16x16xf32>
    %39 = arith.truncf %38 : vector<16x16xf32> to vector<16x16xbf16>
    %cst_15 = arith.constant dense<0.000000e+00> : vector<16x16xf32>
    %40 = tpu.matmul %3, %39, %cst_15 {dimension_numbers = #tpu.dot_dimension_numbers<[1], [0], [0], [1], [0, 0, 1, 1], [], []>} : vector<16x16xbf16>, vector<16x16xbf16>, vector<16x16xf32> -> vector<16x16xf32>
    %41 = arith.maximumf %32, %40 : vector<16x16xf32>
    %42 = vector.extract_strided_slice %5 {offsets = [4, 0], sizes = [1, 16], strides = [1, 1]} : vector<8x16xi32> to vector<1x16xi32>
    %43 = vector.broadcast %42 : vector<1x16xi32> to vector<16x16xi32>
    %44 = arith.cmpi eq, %43, %6 : vector<16x16xi32>
    %cst_16 = arith.constant 1.000000e+00 : f32
    %cst_17 = arith.constant 0.000000e+00 : f32
    %45 = vector.broadcast %cst_16 : f32 to vector<16x16xf32>
    %46 = vector.broadcast %cst_17 : f32 to vector<16x16xf32>
    %47 = arith.select %44, %45, %46 : vector<16x16xi1>, vector<16x16xf32>
    %48 = arith.truncf %47 : vector<16x16xf32> to vector<16x16xbf16>
    %cst_18 = arith.constant dense<0.000000e+00> : vector<16x16xf32>
    %49 = tpu.matmul %3, %48, %cst_18 {dimension_numbers = #tpu.dot_dimension_numbers<[1], [0], [0], [1], [0, 0, 1, 1], [], []>} : vector<16x16xbf16>, vector<16x16xbf16>, vector<16x16xf32> -> vector<16x16xf32>
    %50 = arith.maximumf %41, %49 : vector<16x16xf32>
    %51 = vector.extract_strided_slice %5 {offsets = [5, 0], sizes = [1, 16], strides = [1, 1]} : vector<8x16xi32> to vector<1x16xi32>
    %52 = vector.broadcast %51 : vector<1x16xi32> to vector<16x16xi32>
    %53 = arith.cmpi eq, %52, %6 : vector<16x16xi32>
    %cst_19 = arith.constant 1.000000e+00 : f32
    %cst_20 = arith.constant 0.000000e+00 : f32
    %54 = vector.broadcast %cst_19 : f32 to vector<16x16xf32>
    %55 = vector.broadcast %cst_20 : f32 to vector<16x16xf32>
    %56 = arith.select %53, %54, %55 : vector<16x16xi1>, vector<16x16xf32>
    %57 = arith.truncf %56 : vector<16x16xf32> to vector<16x16xbf16>
    %cst_21 = arith.constant dense<0.000000e+00> : vector<16x16xf32>
    %58 = tpu.matmul %3, %57, %cst_21 {dimension_numbers = #tpu.dot_dimension_numbers<[1], [0], [0], [1], [0, 0, 1, 1], [], []>} : vector<16x16xbf16>, vector<16x16xbf16>, vector<16x16xf32> -> vector<16x16xf32>
    %59 = arith.maximumf %50, %58 : vector<16x16xf32>
    %60 = vector.extract_strided_slice %5 {offsets = [6, 0], sizes = [1, 16], strides = [1, 1]} : vector<8x16xi32> to vector<1x16xi32>
    %61 = vector.broadcast %60 : vector<1x16xi32> to vector<16x16xi32>
    %62 = arith.cmpi eq, %61, %6 : vector<16x16xi32>
    %cst_22 = arith.constant 1.000000e+00 : f32
    %cst_23 = arith.constant 0.000000e+00 : f32
    %63 = vector.broadcast %cst_22 : f32 to vector<16x16xf32>
    %64 = vector.broadcast %cst_23 : f32 to vector<16x16xf32>
    %65 = arith.select %62, %63, %64 : vector<16x16xi1>, vector<16x16xf32>
    %66 = arith.truncf %65 : vector<16x16xf32> to vector<16x16xbf16>
    %cst_24 = arith.constant dense<0.000000e+00> : vector<16x16xf32>
    %67 = tpu.matmul %3, %66, %cst_24 {dimension_numbers = #tpu.dot_dimension_numbers<[1], [0], [0], [1], [0, 0, 1, 1], [], []>} : vector<16x16xbf16>, vector<16x16xbf16>, vector<16x16xf32> -> vector<16x16xf32>
    %68 = arith.maximumf %59, %67 : vector<16x16xf32>
    %69 = vector.extract_strided_slice %5 {offsets = [7, 0], sizes = [1, 16], strides = [1, 1]} : vector<8x16xi32> to vector<1x16xi32>
    %70 = vector.broadcast %69 : vector<1x16xi32> to vector<16x16xi32>
    %71 = arith.cmpi eq, %70, %6 : vector<16x16xi32>
    %cst_25 = arith.constant 1.000000e+00 : f32
    %cst_26 = arith.constant 0.000000e+00 : f32
    %72 = vector.broadcast %cst_25 : f32 to vector<16x16xf32>
    %73 = vector.broadcast %cst_26 : f32 to vector<16x16xf32>
    %74 = arith.select %71, %72, %73 : vector<16x16xi1>, vector<16x16xf32>
    %75 = arith.truncf %74 : vector<16x16xf32> to vector<16x16xbf16>
    %cst_27 = arith.constant dense<0.000000e+00> : vector<16x16xf32>
    %76 = tpu.matmul %3, %75, %cst_27 {dimension_numbers = #tpu.dot_dimension_numbers<[1], [0], [0], [1], [0, 0, 1, 1], [], []>} : vector<16x16xbf16>, vector<16x16xbf16>, vector<16x16xf32> -> vector<16x16xf32>
    %77 = arith.maximumf %68, %76 : vector<16x16xf32>
    %c0_28 = arith.constant 0 : index
    %c0_29 = arith.constant 0 : index
    %78 = vector.load %arg6[%c0_28, %c0_29] : memref<16x1xf32, #tpu.memory_space<vmem>>, vector<16x1xf32>
    %79 = vector.broadcast %78 : vector<16x1xf32> to vector<16x16xf32>
    %80 = arith.addf %77, %79 : vector<16x16xf32>
    %cst_30 = arith.constant 0.000000e+00 : f32
    %81 = vector.broadcast %cst_30 : f32 to vector<16x16xf32>
    %82 = arith.maximumf %80, %81 : vector<16x16xf32>
    %c0_31 = arith.constant 0 : index
    %c0_32 = arith.constant 0 : index
    %83 = vector.load %arg7[%c0_31, %c0_32] : memref<128x16xbf16, #tpu.memory_space<vmem>>, vector<128x16xbf16>
    %c0_33 = arith.constant 0 : index
    %c0_34 = arith.constant 0 : index
    %c0_35 = arith.constant 0 : index
    %84 = vector.load %arg3[%c0_33, %c0_34, %c0_35] : memref<1x16x16xbf16, #tpu.memory_space<vmem>>, vector<1x16x16xbf16>
    %85 = vector.shape_cast %84 : vector<1x16x16xbf16> to vector<16x16xbf16>
    %cst_36 = arith.constant dense<0.000000e+00> : vector<128x16xf32>
    %86 = tpu.matmul %83, %85, %cst_36 {dimension_numbers = #tpu.dot_dimension_numbers<[1], [0], [0], [1], [0, 0, 1, 1], [], []>} : vector<128x16xbf16>, vector<16x16xbf16>, vector<128x16xf32> -> vector<128x16xf32>
    %c0_37 = arith.constant 0 : index
    %c0_38 = arith.constant 0 : index
    %87 = vector.load %arg8[%c0_37, %c0_38] : memref<128x16xbf16, #tpu.memory_space<vmem>>, vector<128x16xbf16>
    %88 = arith.truncf %82 : vector<16x16xf32> to vector<16x16xbf16>
    %cst_39 = arith.constant dense<0.000000e+00> : vector<128x16xf32>
    %89 = tpu.matmul %87, %88, %cst_39 {dimension_numbers = #tpu.dot_dimension_numbers<[1], [0], [0], [1], [0, 0, 1, 1], [], []>} : vector<128x16xbf16>, vector<16x16xbf16>, vector<128x16xf32> -> vector<128x16xf32>
    %90 = arith.addf %86, %89 : vector<128x16xf32>
    %c0_40 = arith.constant 0 : index
    %c0_41 = arith.constant 0 : index
    %91 = vector.load %arg9[%c0_40, %c0_41] : memref<128x1xf32, #tpu.memory_space<vmem>>, vector<128x1xf32>
    %92 = vector.broadcast %91 : vector<128x1xf32> to vector<128x16xf32>
    %93 = arith.addf %90, %92 : vector<128x16xf32>
    %cst_42 = arith.constant 0.000000e+00 : f32
    %94 = vector.broadcast %cst_42 : f32 to vector<128x16xf32>
    %95 = arith.maximumf %93, %94 : vector<128x16xf32>
    %c0_43 = arith.constant 0 : index
    %c0_44 = arith.constant 0 : index
    %c0_45 = arith.constant 0 : index
    %96 = vector.load %arg10[%c0_43, %c0_44, %c0_45] : memref<1x128x16xf32, #tpu.memory_space<vmem>>, vector<1x128x16xf32>
    %97 = vector.shape_cast %96 : vector<1x128x16xf32> to vector<128x16xf32>
    %98 = vector.shape_cast %95 : vector<128x16xf32> to vector<1x128x16xf32>
    tpu.vector_store %arg10[%c0_43, %c0_44, %c0_45], %98 {strides = array<i32>} : memref<1x128x16xf32, #tpu.memory_space<vmem>>, vector<1x128x16xf32>,
    return
  }
  func.func @transform_0(%arg0: i32, %arg1: i32) -> (i32, i32, i32) {
    %c0_i32 = arith.constant 0 : i32
    %c0_i32_0 = arith.constant 0 : i32
    %c0_i32_1 = arith.constant 0 : i32
    return %arg0, %c0_i32, %c0_i32_0 : i32, i32, i32
  }
  func.func @transform_1(%arg0: i32, %arg1: i32) -> (i32, i32, i32) {
    %c0_i32 = arith.constant 0 : i32
    %c0_i32_0 = arith.constant 0 : i32
    return %arg0, %c0_i32, %arg1 : i32, i32, i32
  }
  func.func @transform_2(%arg0: i32, %arg1: i32) -> (i32, i32, i32) {
    %c0_i32 = arith.constant 0 : i32
    %c0_i32_0 = arith.constant 0 : i32
    return %arg0, %c0_i32, %arg1 : i32, i32, i32
  }
  func.func @transform_3(%arg0: i32, %arg1: i32) -> (i32, i32) {
    %c0_i32 = arith.constant 0 : i32
    %c0_i32_0 = arith.constant 0 : i32
    %c0_i32_1 = arith.constant 0 : i32
    return %c0_i32, %c0_i32_0 : i32, i32
  }
  func.func @transform_4(%arg0: i32, %arg1: i32) -> (i32, i32) {
    %c0_i32 = arith.constant 0 : i32
    %c0_i32_0 = arith.constant 0 : i32
    %c0_i32_1 = arith.constant 0 : i32
    return %c0_i32, %c0_i32_0 : i32, i32
  }
  func.func @transform_5(%arg0: i32, %arg1: i32) -> (i32, i32) {
    %c0_i32 = arith.constant 0 : i32
    %c0_i32_0 = arith.constant 0 : i32
    %c0_i32_1 = arith.constant 0 : i32
    return %c0_i32, %c0_i32_0 : i32, i32
  }
  func.func @transform_6(%arg0: i32, %arg1: i32) -> (i32, i32) {
    %c0_i32 = arith.constant 0 : i32
    %c0_i32_0 = arith.constant 0 : i32
    %c0_i32_1 = arith.constant 0 : i32
    return %c0_i32, %c0_i32_0 : i32, i32
  }
  func.func @transform_7(%arg0: i32, %arg1: i32) -> (i32, i32) {
    %c0_i32 = arith.constant 0 : i32
    %c0_i32_0 = arith.constant 0 : i32
    %c0_i32_1 = arith.constant 0 : i32
    return %c0_i32, %c0_i32_0 : i32, i32
  }
  func.func @transform_8(%arg0: i32, %arg1: i32) -> (i32, i32, i32) {
    %c0_i32 = arith.constant 0 : i32
    %c0_i32_0 = arith.constant 0 : i32
    return %arg0, %c0_i32, %arg1 : i32, i32, i32
  }
}

</mosaic_0001>

<bundles_post_ra>
// kernel: graphsage_forward.1
= control target key start
LH: loop header
LB: loop body
LE: loop exit
PB: predicated region body
PF: predicated region fallthrough
CT: control target
= control target key end

     0   :  { %s1854_s27 = smov 0   ;;  %s1856_s28 = smov 0   ;;  %s2137_s0 = inlined_call_operand.vmem [shape: bf16[2,16,16], index: 0, kind: input, shape index: {}, may-alias: {0,1}]   ;;  %s2138_s1 = inlined_call_operand.vmem [shape: bf16[2,16,16], index: 1, kind: input, shape index: {}, may-alias: {0,1}]   ;;  %s2139_s2 = inlined_call_operand.vmem [shape: s32[2,8,16], index: 2, kind: input, shape index: {}]   ;;  %s2140_s3 = inlined_call_operand.vmem [shape: bf16[16,16], index: 3, kind: input, shape index: {}]   ;;  %s2141_s4 = inlined_call_operand.vmem [shape: f32[16,1], index: 4, kind: input, shape index: {}]   ;;  %s2142_s5 = inlined_call_operand.vmem [shape: bf16[128,16], index: 5, kind: input, shape index: {}]   ;;  %s2143_s6 = inlined_call_operand.vmem [shape: bf16[128,16], index: 6, kind: input, shape index: {}]   ;;  %s2144_s7 = inlined_call_operand.vmem [shape: f32[128,1], index: 7, kind: input, shape index: {}]   ;;  %s2145_s8 = inlined_call_operand.vmem [shape: f32[2,128,16], index: 8, kind: output, shape index: {}]  }
   0x1   :  { %s1858_s29 = smov 0  }
   0x2 LB: > { %s30_s30 = sadd.s32 1, %s1799_s28  ;;  %p1527_p0 = scmp.ge.s32.totalorder %s1803_s29, 1  ;;  %s1803_s29 = sphi %s1858_s29, %s18_s29   ;;  %s1799_s28 = sphi %s1856_s28, %s2159_s28   ;;  %s1795_s27 = sphi %s1854_s27, %s2158_s27  }
   0x3   : > { %p32_p1 = scmp.ge.s32.totalorder %s30_s30, 2  ;;  %p305_p2 = scmp.lt.s32.totalorder %s1803_s29, 3 }
   0x5   : > { %s2161_s30 = smov (%p32_p1, %s30_s30), 0  ;;  %p306_p3 = pnand %p1527_p0, %p305_p2 }
   0x6   : > { %p357_p4 = scmp.lt.s32.totalorder (!%p306_p3), %s1795_s27, 1 }
   0x7   : > { %309 = sbr.rel (%p306_p3) target bundleno = 691 (0x2b3), region = 52 }
   0xc   : > { %v1805_v0 = vmov 0.0   ;;  %vm1806_vm0 = vmmov 0   ;;  %s2163_s27 = smov (!%p357_p4, %s1795_s27), 1  ;;  %v1762_v2 = vld [vmem:[%s2140_s3] sm:$0xff]   ;;  %vm405_vm1 = vcmask 130048   ;;  %v464_v3 = vlaneseq  ;;  %v891_v32 = vld [vmem:[%s2141_s4 + $0x8] sm:$0xff] }
   0xd   : > { %1641 = vmatprep.subr.bf16.mxu0 %v1805_v0  ;;  %1643 = vmatprep.mubr.msk.bf16.mxu0 %vm1806_vm0, %v1805_v0  ;;  %s1881_s9 = sshll.u32 %s2163_s27, 3  ;;  %v1807_v11 = vmov 1.0|1.0   ;;  %v890_v30 = vld [vmem:[%s2141_s4] sm:$0xff]  ;;  %v1808_v31 = vmov 0   ;;  %v1271_v33 = vld [vmem:[%s2144_s7 + $0x10] sm:$0xff] }
   0xe   : > { %1647 = vmatprep.subr.bf16.mxu1 %v1805_v0  ;;  %1649 = vmatprep.mubr.msk.bf16.mxu1 %vm1806_vm0, %v1805_v0  ;;  %s361_s12 = scalar_lea.vmem %s2137_s0, %s1881_s9  ;;  %s376_s17 = scalar_lea.vmem %s2139_s2, %s1881_s9  ;;  %v465_v4 = vshrl.u32 %v464_v3, 7  ;;  %v1273_v34 = vld [vmem:[%s2144_s7 + $0x20] sm:$0xff]  ;;  %v1275_v35 = vld [vmem:[%s2144_s7 + $0x30] sm:$0xff]  ;;  %v1767_v49 = vld [vmem:[%s2142_s5 + $0x8] sm:$0xff]  }
   0xf   : > { %v1761_v1 = vld [vmem:[%s361_s12] sm:$0xff]   ;;  %1759 = vset.pattern.permute.xlu0 %v1808_v31  ;;  %1760 = vset.pattern.permute.xlu1 %v1808_v31  ;;  %v1279_v37 = vld [vmem:[%s2144_s7 + $0x50] sm:$0xff]  ;;  %s369_s21 = scalar_lea.vmem %s2138_s1, %s1881_s9  ;;  %v1771_v52 = vld [vmem:[%s2142_s5 + $0x18] sm:$0xff]   ;;  %s1602_s18 = sshll.u32 %s2163_s27, 7 }
  0x10   : > { %1642 = vmatpush3.bf16.msra.mxu0 %v1761_v1  ;;  %v463_v5 = vld [vmem:[%s376_s17] sm:$0xff]  ;;  %v466_v6 = vadd.s32 8, %v465_v4  ;;  %v469_v7 = vsub.s32 0, %v465_v4  ;;  %v528_v8 = vsub.s32 1, %v465_v4  ;;  %v580_v12 = vsub.s32 2, %v465_v4  ;;  %894 = vperm.xlu0 %1759, %v890_v30   ;;  %v1283_v39 = vld [vmem:[%s2144_s7 + $0x70] sm:$0xff] }
  0x11   : > { %1653 = vmatprep.subr.bf16.mxu0 %v1805_v0  ;;  %v632_v13 = vsub.s32 3, %v465_v4  ;;  %v684_v18 = vsub.s32 4, %v465_v4  ;;  %v736_v19 = vsub.s32 5, %v465_v4  ;;  %v788_v24 = vsub.s32 6, %v465_v4  ;;  %v1277_v36 = vld [vmem:[%s2144_s7 + $0x40] sm:$0xff]  ;;  %v1769_v51 = vld [vmem:[%s2142_s5 + $0x10] sm:$0xff]  }
  0x12   : > { %v470_v9 = vrot.slane %v463_v5, %v469_v7  ;;  %v529_v10 = vrot.slane %v463_v5, %v528_v8  ;;  %v581_v14 = vrot.slane %v463_v5, %v580_v12  ;;  %v840_v25 = vsub.s32 7, %v465_v4  ;;  %v1281_v38 = vld [vmem:[%s2144_s7 + $0x60] sm:$0xff]  ;;  %v1775_v54 = vld [vmem:[%s2142_s5 + $0x28] sm:$0xff]   ;;  %v1777_v55 = vld [vmem:[%s2142_s5 + $0x30] sm:$0xff]  }
  0x13   : > { %1644 = vmatmul.mubr.msk.bf16.vlgmr.msra.gmra.mxu0 %vm405_vm1, %v1762_v2  ;;  %v633_v15 = vrot.slane %v463_v5, %v632_v13  ;;  %v685_v20 = vrot.slane %v463_v5, %v684_v18  ;;  %v737_v21 = vrot.slane %v463_v5, %v736_v19  ;;  %v789_v26 = vrot.slane %v463_v5, %v788_v24  ;;  %v1764_v47 = vld [vmem:[%s369_s21] sm:$0xff]   ;;  %v1779_v56 = vld [vmem:[%s2142_s5 + $0x38] sm:$0xff]   ;;  %v1270_v58 = vld [vmem:[%s2144_s7 + $0x8] sm:$0xff]  ;;  %s2094_s21 = scalar_lea.vmem %s2145_s8, %s1602_s18 }
  0x14   : > { %1655 = vmatprep.mubr.msk.bf16.mxu0 %vm1806_vm0, %v1805_v0  ;;  %vm471_vm2 = vcmp.eq.s32.totalorder %v470_v9, %v465_v4  ;;  %vm472_vm3 = vcmp.eq.s32.totalorder %v470_v9, %v466_v6  ;;  %vm530_vm4 = vcmp.eq.s32.totalorder %v529_v10, %v465_v4  ;;  %vm531_vm5 = vcmp.eq.s32.totalorder %v529_v10, %v466_v6  ;;  %v1765_v48 = vld [vmem:[%s2142_s5] sm:$0xff]   ;;  %v1272_v59 = vld [vmem:[%s2144_s7 + $0x18] sm:$0xff]  ;;  %v1274_v60 = vld [vmem:[%s2144_s7 + $0x28] sm:$0xff] }
  0x15   : > { %vm1541_vm6 = vmpackc.low %vm472_vm3, %vm471_vm2  ;;  %vm582_vm8 = vcmp.eq.s32.totalorder %v581_v14, %v465_v4  ;;  %vm583_vm9 = vcmp.eq.s32.totalorder %v581_v14, %v466_v6  ;;  %vm634_vm10 = vcmp.eq.s32.totalorder %v633_v15, %v465_v4  ;;  %vm635_vm11 = vcmp.eq.s32.totalorder %v633_v15, %v466_v6  ;;  %899 = vperm.xlu0 %1759, %v891_v32   ;;  %v1766_v50 = vld [vmem:[%s2143_s6] sm:$0xff]   ;;  %v1276_v61 = vld [vmem:[%s2144_s7 + $0x38] sm:$0xff] }
  0x16   : > { %1648 = vmatpush3.bf16.msk.msra.mxu1 %vm1541_vm6, %v1807_v11  ;;  %vm1544_vm7 = vmpackc.low %vm531_vm5, %vm530_vm4  ;;  %vm686_vm14 = vcmp.eq.s32.totalorder %v685_v20, %v465_v4  ;;  %vm687_vm15 = vcmp.eq.s32.totalorder %v685_v20, %v466_v6  ;;  %vm738_vm2 = vcmp.eq.s32.totalorder %v737_v21, %v465_v4  ;;  %vm739_vm3 = vcmp.eq.s32.totalorder %v737_v21, %v466_v6  ;;  %v1773_v53 = vld [vmem:[%s2142_s5 + $0x20] sm:$0xff]   ;;  %v1278_v62 = vld [vmem:[%s2144_s7 + $0x48] sm:$0xff] }
  0x17   : > { %1654 = vmatpush3.bf16.msk.msra.mxu0 %vm1544_vm7, %v1807_v11  ;;  %1659 = vmatprep.subr.bf16.mxu1 %v1805_v0  ;;  %vm1902_vm12 = vmpackc.low %vm583_vm9, %vm582_vm8  ;;  %v841_v27 = vrot.slane %v463_v5, %v840_v25  ;;  %vm790_vm6 = vcmp.eq.s32.totalorder %v789_v26, %v465_v4  ;;  %vm791_vm7 = vcmp.eq.s32.totalorder %v789_v26, %v466_v6  ;;  %v1269_v57 = vld [vmem:[%s2144_s7] sm:$0xff]  ;;  %v1280_v63 = vld [vmem:[%s2144_s7 + $0x58] sm:$0xff] }
  0x18   : > { %1665 = vmatprep.subr.bf16.mxu0 %v1805_v0  ;;  %vm1906_vm13 = vmpackc.low %vm635_vm11, %vm634_vm10  ;;  %1287 = vperm.xlu1 %1760, %v1269_v57   ;;  %v1284_v1 = vld [vmem:[%s2144_s7 + $0x78] sm:$0xff] }
  0x19   : > { %vm1910_vm4 = vmpackc.low %vm687_vm15, %vm686_vm14  ;;  %vm842_vm8 = vcmp.eq.s32.totalorder %v841_v27, %v465_v4  ;;  %vm843_vm9 = vcmp.eq.s32.totalorder %v841_v27, %v466_v6  ;;  %1297 = vperm.xlu0 %1759, %v1271_v33   ;;  %vm458_vm14 = vcmask 125952   ;;  %v1772_v57 = vld [vmem:[%s2143_s6 + $0x18] sm:$0xff]  }
  0x1a   : > { %vm1914_vm5 = vmpackc.low %vm739_vm3, %vm738_vm2 }
  0x1b   : > { %vm1918_vm10 = vmpackc.low %vm791_vm7, %vm790_vm6 }
  0x1c   : > { %vm1922_vm11 = vmpackc.low %vm843_vm9, %vm842_vm8  ;;  %1292 = vperm.xlu1 %1760, %v1270_v58   ;;  %v1774_v58 = vld [vmem:[%s2143_s6 + $0x20] sm:$0xff]  }
  0x1d   : > { %1307 = vperm.xlu0 %1759, %v1273_v34  }
  0x20   : > { %1302 = vperm.xlu1 %1760, %v1272_v59   ;;  %v1776_v59 = vld [vmem:[%s2143_s6 + $0x28] sm:$0xff]  }
  0x21   : > { %1317 = vperm.xlu0 %1759, %v1275_v35  }
  0x24   : > { %1312 = vperm.xlu1 %1760, %v1274_v60   ;;  %v1778_v60 = vld [vmem:[%s2143_s6 + $0x30] sm:$0xff]  }
  0x25   : > { %1327 = vperm.xlu0 %1759, %v1277_v36  }
  0x28   : > { %1322 = vperm.xlu1 %1760, %v1276_v61   ;;  %v1780_v61 = vld [vmem:[%s2143_s6 + $0x38] sm:$0xff]  }
  0x29   : > { %1337 = vperm.xlu0 %1759, %v1279_v37  }
  0x2c   : > { %1332 = vperm.xlu1 %1760, %v1278_v62  }
  0x2d   : > { %1347 = vperm.xlu0 %1759, %v1281_v38  }
  0x30   : > { %1342 = vperm.xlu1 %1760, %v1280_v63  }
  0x31   : > { %1357 = vperm.xlu0 %1759, %v1283_v39  }
  0x8b   : > { %v895_v37 = vpop.permute.xlu0 %894 }
  0xd3   : > { %v443_v40 = vpop.f32.mrf.mxu0 }
  0xd4   : > { %v1603_v41 = vpack.c.bf16 %v443_v40, %v443_v40 }
  0xd5   : > { %v1645_v42 = vpop.f32.mrf.mxu0 }
  0xd6   : > { %459 = vst.msk [vmem:[#allocation2] sm:$0xf] %vm458_vm14, %v1603_v41 }
  0xd7   : > { %v446_v43 = vpop.f32.mrf.mxu0 }
  0xd8   : > { %v1604_v44 = vpack.c.bf16 %v446_v43, %v446_v43 }
  0xd9   : > { %v1646_v45 = vpop.f32.mrf.mxu0 }
  0xda   : > { %460 = vst.msk [vmem:[#allocation2 + $0x4] sm:$0xf] %vm458_vm14, %v1604_v44 }
  0xe1   : > { %v1763_v46 = vld [vmem:[#allocation2] sm:$0xff]  }
  0xe2   : > { %1650 = vmatmul.mubr.msk.bf16.vlgmr.msra.gmra.mxu1 %vm405_vm1, %v1763_v46  ;;  %1656 = vmatmul.mubr.msk.bf16.vlgmr.msra.gmra.mxu0 %vm405_vm1, %v1763_v46 }
  0xe3   : > { %1660 = vmatpush3.bf16.msk.msra.mxu1 %vm1902_vm12, %v1807_v11  ;;  %1666 = vmatpush3.bf16.msk.msra.mxu0 %vm1906_vm13, %v1807_v11 }
  0xe4   : > { %1661 = vmatprep.mubr.msk.bf16.mxu1 %vm1806_vm0, %v1805_v0  ;;  %1667 = vmatprep.mubr.msk.bf16.mxu0 %vm1806_vm0, %v1805_v0 }
  0xe5   : > { %1671 = vmatprep.subr.bf16.mxu1 %v1805_v0  ;;  %1677 = vmatprep.subr.bf16.mxu0 %v1805_v0 }
  0xea   : > { %1662 = vmatmul.mubr.msk.bf16.vlgmr.msra.gmra.mxu1 %vm405_vm1, %v1763_v46  ;;  %1668 = vmatmul.mubr.msk.bf16.vlgmr.msra.gmra.mxu0 %vm405_vm1, %v1763_v46 }
  0xeb   : > { %1672 = vmatpush3.bf16.msk.msra.mxu1 %vm1910_vm4, %v1807_v11  ;;  %1678 = vmatpush3.bf16.msk.msra.mxu0 %vm1914_vm5, %v1807_v11 }
  0xec   : > { %1673 = vmatprep.mubr.msk.bf16.mxu1 %vm1806_vm0, %v1805_v0  ;;  %1679 = vmatprep.mubr.msk.bf16.mxu0 %vm1806_vm0, %v1805_v0 }
  0xed   : > { %1683 = vmatprep.subr.bf16.mxu1 %v1805_v0  ;;  %1689 = vmatprep.subr.bf16.mxu0 %v1805_v0 }
  0xf2   : > { %1674 = vmatmul.mubr.msk.bf16.vlgmr.msra.gmra.mxu1 %vm405_vm1, %v1763_v46  ;;  %1680 = vmatmul.mubr.msk.bf16.vlgmr.msra.gmra.mxu0 %vm405_vm1, %v1763_v46 }
  0xf3   : > { %1684 = vmatpush3.bf16.msk.msra.mxu1 %vm1918_vm10, %v1807_v11  ;;  %1690 = vmatpush3.bf16.msk.msra.mxu0 %vm1922_vm11, %v1807_v11 }
  0xf4   : > { %1685 = vmatprep.mubr.msk.bf16.mxu1 %vm1806_vm0, %v1805_v0  ;;  %1691 = vmatprep.mubr.msk.bf16.mxu0 %vm1806_vm0, %v1805_v0  ;;  %v1282_v0 = vld [vmem:[%s2144_s7 + $0x68] sm:$0xff] }
  0xf5   : > { %1713 = vmatprep.subr.bf16.mxu0 %v1764_v47  ;;  %1352 = vperm.xlu1 %1760, %v1282_v0  }
  0xf9   : > { %1362 = vperm.xlu1 %1760, %v1284_v1   ;;  %v1288_v1 = vpop.permute.xlu1 %1287 }
  0xfa   : > { %1686 = vmatmul.mubr.msk.bf16.vlgmr.msra.gmra.mxu1 %vm405_vm1, %v1763_v46  ;;  %1692 = vmatmul.mubr.msk.bf16.vlgmr.msra.gmra.mxu0 %vm405_vm1, %v1763_v46 }
  0xfb   : > { %1714 = vmatpush3.bf16.msra.mxu0 %v1764_v47  ;;  %1715 = vmatprep.mubr.msk.bf16.mxu0 %vm405_vm1, %v1765_v48 }
  0xfc   : > { %1697 = vmatprep.mubr.msk.bf16.mxu1 %vm405_vm1, %v1766_v50  ;;  %v900_v50 = vpop.permute.xlu0 %899 }
 0x102   : > { %1716 = vmatmul.mubr.msk.bf16.vlgmr.msra.gmra.mxu0 %vm405_vm1, %v1767_v49 }
 0x103   : > { %1719 = vmatprep.mubr.msk.bf16.mxu0 %vm405_vm1, %v1769_v51 }
 0x10a   : > { %1720 = vmatmul.mubr.msk.bf16.gmra.mxu0 %vm405_vm1, %v1771_v52 }
 0x10b   : > { %1723 = vmatprep.mubr.msk.bf16.mxu0 %vm405_vm1, %v1773_v53 }
 0x112   : > { %1724 = vmatmul.mubr.msk.bf16.gmra.mxu0 %vm405_vm1, %v1775_v54 }
 0x113   : > { %1727 = vmatprep.mubr.msk.bf16.mxu0 %vm405_vm1, %v1777_v55  ;;  %v1768_v55 = vld [vmem:[%s2143_s6 + $0x8] sm:$0xff]  }
 0x11a   : > { %1728 = vmatmul.mubr.msk.bf16.gmra.mxu0 %vm405_vm1, %v1779_v56  ;;  %v1770_v56 = vld [vmem:[%s2143_s6 + $0x10] sm:$0xff]  }
 0x1a2   : > { %v519_v2 = vpop.f32.mrf.mxu1  ;;  %v569_v3 = vpop.f32.mrf.mxu0 }
 0x1a3   : > { %v576_v14 = vmax.f32 %v519_v2, %v569_v3 }
 0x1a4   : > { %v1651_v4 = vpop.f32.mrf.mxu1  ;;  %v1657_v5 = vpop.f32.mrf.mxu0 }
 0x1a5   : > { %v1293_v4 = vpop.permute.xlu1 %1292  ;;  %v1298_v5 = vpop.permute.xlu0 %1297 }
 0x1a6   : > { %v522_v6 = vpop.f32.mrf.mxu1  ;;  %v572_v7 = vpop.f32.mrf.mxu0 }
 0x1a7   : > { %v577_v20 = vmax.f32 %v522_v6, %v572_v7 }
 0x1a8   : > { %v1652_v8 = vpop.f32.mrf.mxu1  ;;  %v1658_v9 = vpop.f32.mrf.mxu0 }
 0x1a9   : > { %v1303_v7 = vpop.permute.xlu1 %1302  ;;  %v1308_v9 = vpop.permute.xlu0 %1307 }
 0x1aa   : > { %v621_v10 = vpop.f32.mrf.mxu1  ;;  %v673_v11 = vpop.f32.mrf.mxu0 }
 0x1ab   : > { %v628_v17 = vmax.f32 %v576_v14, %v621_v10 }
 0x1ac   : > { %v1663_v12 = vpop.f32.mrf.mxu1  ;;  %v1669_v13 = vpop.f32.mrf.mxu0 }
 0x1ad   : > { %v680_v23 = vmax.f32 %v628_v17, %v673_v11  ;;  %v1313_v11 = vpop.permute.xlu1 %1312  ;;  %v1318_v13 = vpop.permute.xlu0 %1317 }
 0x1ae   : > { %v624_v15 = vpop.f32.mrf.mxu1  ;;  %v676_v16 = vpop.f32.mrf.mxu0 }
 0x1af   : > { %v629_v24 = vmax.f32 %v577_v20, %v624_v15 }
 0x1b0   : > { %v1664_v18 = vpop.f32.mrf.mxu1  ;;  %v1670_v19 = vpop.f32.mrf.mxu0 }
 0x1b1   : > { %v681_v30 = vmax.f32 %v629_v24, %v676_v16  ;;  %v1323_v20 = vpop.permute.xlu1 %1322 }
 0x1b2   : > { %v725_v21 = vpop.f32.mrf.mxu1  ;;  %v777_v22 = vpop.f32.mrf.mxu0 }
 0x1b3   : > { %v732_v27 = vmax.f32 %v680_v23, %v725_v21 }
 0x1b4   : > { %v1675_v25 = vpop.f32.mrf.mxu1  ;;  %v1681_v26 = vpop.f32.mrf.mxu0 }
 0x1b5   : > { %v784_v33 = vmax.f32 %v732_v27, %v777_v22  ;;  %v1328_v26 = vpop.permute.xlu0 %1327 }
 0x1b6   : > { %v728_v28 = vpop.f32.mrf.mxu1  ;;  %v780_v29 = vpop.f32.mrf.mxu0 }
 0x1b7   : > { %v733_v34 = vmax.f32 %v681_v30, %v728_v28 }
 0x1b8   : > { %v1676_v31 = vpop.f32.mrf.mxu1  ;;  %v1682_v32 = vpop.f32.mrf.mxu0 }
 0x1b9   : > { %v785_v41 = vmax.f32 %v733_v34, %v780_v29 }
 0x1ba   : > { %v829_v35 = vpop.f32.mrf.mxu1  ;;  %v881_v36 = vpop.f32.mrf.mxu0 }
 0x1bb   : > { %v836_v38 = vmax.f32 %v784_v33, %v829_v35 }
 0x1bc   : > { %v1687_v39 = vpop.f32.mrf.mxu1  ;;  %v1693_v40 = vpop.f32.mrf.mxu0 }
 0x1bd   : > { %v888_v42 = vmax.f32 %v836_v38, %v881_v36  ;;  %v1333_v36 = vpop.permute.xlu1 %1332 }
 0x1be   : > { %v832_v43 = vpop.f32.mrf.mxu1  ;;  %v884_v44 = vpop.f32.mrf.mxu0 }
 0x1bf   : > { %v837_v45 = vmax.f32 %v785_v41, %v832_v43  ;;  %v902_v48 = vadd.f32 %v895_v37, %v888_v42  ;;  %v1338_v41 = vpop.permute.xlu0 %1337 }
 0x1c0   : > { %v1688_v46 = vpop.f32.mrf.mxu1  ;;  %v1694_v47 = vpop.f32.mrf.mxu0 }
 0x1c1   : > { %v889_v49 = vmax.f32 %v837_v45, %v884_v44  ;;  %v904_v52 = vmax.f32 %v902_v48, 0.0 }
 0x1c2   : > { %v1717_v62 = vpop.f32.mrf.mxu0 }
 0x1c3   : > { %v903_v51 = vadd.f32 %v900_v50, %v889_v49 }
 0x1c4   : > { %v1206_v63 = vpop.f32.mrf.mxu0 }
 0x1c5   : > { %v905_v53 = vmax.f32 %v903_v51, 0.0  ;;  %v1343_v51 = vpop.permute.xlu1 %1342 }
 0x1c6   : > { %v1718_v0 = vpop.f32.mrf.mxu0 }
 0x1c7   : > { %v940_v54 = vpack.c.bf16 %v905_v53, %v904_v52 }
 0x1c8   : > { %v1209_v2 = vpop.f32.mrf.mxu0 }
 0x1c9   : > { %1695 = vmatprep.subr.bf16.mxu1 %v940_v54 }
 0x1ca   : > { %1696 = vmatpush3.bf16.msra.mxu1 %v940_v54  ;;  %v1721_v3 = vpop.f32.mrf.mxu0 }
 0x1cc   : > { %v1222_v6 = vpop.f32.mrf.mxu0 }
 0x1cd   : > { %1698 = vmatmul.mubr.msk.bf16.vlgmr.msra.gmra.mxu1 %vm405_vm1, %v1768_v55 }
 0x1ce   : > { %1701 = vmatprep.mubr.msk.bf16.mxu1 %vm405_vm1, %v1770_v56  ;;  %v1722_v8 = vpop.f32.mrf.mxu0 }
 0x1d0   : > { %v1225_v10 = vpop.f32.mrf.mxu0 }
 0x1d2   : > { %v1725_v16 = vpop.f32.mrf.mxu0 }
 0x1d4   : > { %v1238_v25 = vpop.f32.mrf.mxu0 }
 0x1d5   : > { %1702 = vmatmul.mubr.msk.bf16.gmra.mxu1 %vm405_vm1, %v1772_v57  ;;  %v1348_v57 = vpop.permute.xlu0 %1347 }
 0x1d6   : > { %1705 = vmatprep.mubr.msk.bf16.mxu1 %vm405_vm1, %v1774_v58  ;;  %v1726_v35 = vpop.f32.mrf.mxu0 }
 0x1d8   : > { %v1241_v46 = vpop.f32.mrf.mxu0 }
 0x1da   : > { %v1729_v56 = vpop.f32.mrf.mxu0 }
 0x1dd   : > { %1706 = vmatmul.mubr.msk.bf16.gmra.mxu1 %vm405_vm1, %v1776_v59 }
 0x1de   : > { %1709 = vmatprep.mubr.msk.bf16.mxu1 %vm405_vm1, %v1778_v60 }
 0x1e5   : > { %1710 = vmatmul.mubr.msk.bf16.gmra.mxu1 %vm405_vm1, %v1780_v61 }
 0x28d   : > { %v1699_v12 = vpop.f32.mrf.mxu1 }
 0x28e   : > { %v1215_v14 = vadd.f32 %v1717_v62, %v1699_v12 }
 0x28f   : > { %v1039_v15 = vpop.f32.mrf.mxu1 }
 0x290   : > { %v1367_v17 = vadd.f32 %v1298_v5, %v1215_v14  ;;  %v1207_v18 = vadd.f32 %v1206_v63, %v1039_v15 }
 0x291   : > { %v1700_v19 = vpop.f32.mrf.mxu1 }
 0x292   : > { %v1383_v21 = vmax.f32 %v1367_v17, 0.0  ;;  %v1365_v22 = vadd.f32 %v1288_v1, %v1207_v18  ;;  %v1218_v23 = vadd.f32 %v1718_v0, %v1700_v19 }
 0x293   : > { %v1042_v24 = vpop.f32.mrf.mxu1 }
 0x294   : > { %1399 = vst.msk [vmem:[%s2094_s21 + $0x10] sm:$0xff] %vm405_vm1, %v1383_v21  ;;  %v1381_v27 = vmax.f32 %v1365_v22, 0.0  ;;  %v1368_v28 = vadd.f32 %v1303_v7, %v1218_v23  ;;  %v1210_v29 = vadd.f32 %v1209_v2, %v1042_v24  ;;  %v1254_v2 = vpop.f32.mrf.mxu0 }
 0x295   : > { %v1703_v30 = vpop.f32.mrf.mxu1 }
 0x296   : > { %1397 = vst.msk [vmem:[%s2094_s21] sm:$0xff] %vm405_vm1, %v1381_v27  ;;  %v1384_v31 = vmax.f32 %v1368_v28, 0.0  ;;  %v1366_v32 = vadd.f32 %v1293_v4, %v1210_v29  ;;  %v1231_v33 = vadd.f32 %v1721_v3, %v1703_v30  ;;  %v1353_v3 = vpop.permute.xlu1 %1352 }
 0x297   : > { %v1055_v34 = vpop.f32.mrf.mxu1 }
 0x298   : > { %1400 = vst.msk [vmem:[%s2094_s21 + $0x18] sm:$0xff] %vm405_vm1, %v1384_v31  ;;  %v1382_v37 = vmax.f32 %v1366_v32, 0.0  ;;  %v1371_v38 = vadd.f32 %v1318_v13, %v1231_v33  ;;  %v1223_v39 = vadd.f32 %v1222_v6, %v1055_v34  ;;  %v1730_v13 = vpop.f32.mrf.mxu0 }
 0x299   : > { %v1704_v40 = vpop.f32.mrf.mxu1 }
 0x29a   : > { %1398 = vst.msk [vmem:[%s2094_s21 + $0x8] sm:$0xff] %vm405_vm1, %v1382_v37  ;;  %v1387_v42 = vmax.f32 %v1371_v38, 0.0  ;;  %v1369_v43 = vadd.f32 %v1308_v9, %v1223_v39  ;;  %v1234_v44 = vadd.f32 %v1722_v8, %v1704_v40  ;;  %v1358_v8 = vpop.permute.xlu0 %1357  ;;  %v1363_v18 = vpop.permute.xlu1 %1362 }
 0x29b   : > { %v1058_v45 = vpop.f32.mrf.mxu1  ;;  %v1257_v22 = vpop.f32.mrf.mxu0 }
 0x29c   : > { %1403 = vst.msk [vmem:[%s2094_s21 + $0x30] sm:$0xff] %vm405_vm1, %v1387_v42  ;;  %v1385_v47 = vmax.f32 %v1369_v43, 0.0  ;;  %v1372_v48 = vadd.f32 %v1323_v20, %v1234_v44  ;;  %v1226_v49 = vadd.f32 %v1225_v10, %v1058_v45 }
 0x29d   : > { %v1707_v50 = vpop.f32.mrf.mxu1 }
 0x29e   : > { %1401 = vst.msk [vmem:[%s2094_s21 + $0x20] sm:$0xff] %vm405_vm1, %v1385_v47  ;;  %v1388_v52 = vmax.f32 %v1372_v48, 0.0  ;;  %v1370_v53 = vadd.f32 %v1313_v11, %v1226_v49  ;;  %v1247_v54 = vadd.f32 %v1725_v16, %v1707_v50 }
 0x29f   : > { %v1071_v55 = vpop.f32.mrf.mxu1 }
 0x2a0   : > { %1404 = vst.msk [vmem:[%s2094_s21 + $0x38] sm:$0xff] %vm405_vm1, %v1388_v52  ;;  %v1386_v58 = vmax.f32 %v1370_v53, 0.0  ;;  %v1375_v59 = vadd.f32 %v1338_v41, %v1247_v54  ;;  %v1239_v60 = vadd.f32 %v1238_v25, %v1071_v55 }
 0x2a1   : > { %v1708_v61 = vpop.f32.mrf.mxu1 }
 0x2a2   : > { %1402 = vst.msk [vmem:[%s2094_s21 + $0x28] sm:$0xff] %vm405_vm1, %v1386_v58  ;;  %v1391_v62 = vmax.f32 %v1375_v59, 0.0  ;;  %v1373_v63 = vadd.f32 %v1328_v26, %v1239_v60  ;;  %v1250_v0 = vadd.f32 %v1726_v35, %v1708_v61 }
 0x2a3   : > { %v1074_v1 = vpop.f32.mrf.mxu1 }
 0x2a4   : > { %1407 = vst.msk [vmem:[%s2094_s21 + $0x50] sm:$0xff] %vm405_vm1, %v1391_v62  ;;  %v1389_v4 = vmax.f32 %v1373_v63, 0.0  ;;  %v1376_v5 = vadd.f32 %v1343_v51, %v1250_v0  ;;  %v1242_v6 = vadd.f32 %v1241_v46, %v1074_v1 }
 0x2a5   : > { %v1711_v7 = vpop.f32.mrf.mxu1 }
 0x2a6   : > { %1405 = vst.msk [vmem:[%s2094_s21 + $0x40] sm:$0xff] %vm405_vm1, %v1389_v4  ;;  %v1392_v9 = vmax.f32 %v1376_v5, 0.0  ;;  %v1374_v10 = vadd.f32 %v1333_v36, %v1242_v6  ;;  %v1263_v11 = vadd.f32 %v1729_v56, %v1711_v7 }
 0x2a7   : > { %v1087_v12 = vpop.f32.mrf.mxu1 }
 0x2a8   : > { %1408 = vst.msk [vmem:[%s2094_s21 + $0x58] sm:$0xff] %vm405_vm1, %v1392_v9  ;;  %v1390_v14 = vmax.f32 %v1374_v10, 0.0  ;;  %v1379_v15 = vadd.f32 %v1358_v8, %v1263_v11  ;;  %v1255_v16 = vadd.f32 %v1254_v2, %v1087_v12 }
 0x2a9   : > { %v1712_v17 = vpop.f32.mrf.mxu1 }
 0x2aa   : > { %1406 = vst.msk [vmem:[%s2094_s21 + $0x48] sm:$0xff] %vm405_vm1, %v1390_v14  ;;  %v1395_v19 = vmax.f32 %v1379_v15, 0.0  ;;  %v1377_v20 = vadd.f32 %v1348_v57, %v1255_v16  ;;  %v1266_v21 = vadd.f32 %v1730_v13, %v1712_v17 }
 0x2ab   : > { %v1090_v23 = vpop.f32.mrf.mxu1 }
 0x2ac   : > { %1411 = vst.msk [vmem:[%s2094_s21 + $0x70] sm:$0xff] %vm405_vm1, %v1395_v19  ;;  %v1393_v24 = vmax.f32 %v1377_v20, 0.0  ;;  %v1380_v25 = vadd.f32 %v1363_v18, %v1266_v21  ;;  %v1258_v26 = vadd.f32 %v1257_v22, %v1090_v23 }
 0x2ae   : > { %1409 = vst.msk [vmem:[%s2094_s21 + $0x60] sm:$0xff] %vm405_vm1, %v1393_v24  ;;  %v1396_v27 = vmax.f32 %v1380_v25, 0.0  ;;  %v1378_v28 = vadd.f32 %v1353_v3, %v1258_v26 }
 0x2b0   : > { %1412 = vst.msk [vmem:[%s2094_s21 + $0x78] sm:$0xff] %vm405_vm1, %v1396_v27  ;;  %v1394_v29 = vmax.f32 %v1378_v28, 0.0 }
 0x2b2   : > { %1410 = vst.msk [vmem:[%s2094_s21 + $0x68] sm:$0xff] %vm405_vm1, %v1394_v29 }
 0x2b3 PF: > { %s18_s29 = sadd.s32 1, %s1803_s29   ;;  %s2158_s27 = smov %s1799_s28 }
 0x2b4   : > { %p15_p5 = scmp.ge.s32.totalorder %s18_s29, 4   ;;  %s2159_s28 = smov %s2161_s30 }
 0x2b6   :  { %17 = sbr.rel (!%p15_p5) target bundleno = 2 (0x2), region = 92 }

</bundles_post_ra>
